<compile_context>
chip_gen: v6e
topology: v6e:2x2x1
jax: 0.10.0
libtpu: 0.0.40
codegen_flags: <defaults>
</compile_context>

<pallas_src>
import jax
import jax.numpy as jnp
from jax import lax
from jax.experimental import pallas as pl
from jax.experimental.pallas import tpu as pltpu

BN_EPS = 1e-5
LANE = 128
SUBLANE = 8
VMEM_LIMIT = 48 * 1024 * 1024   # headroom under v7x's 64 MiB VMEM; fine on v5e/v6e too


def _round_up(x, m):
    return (x + m - 1) // m * m


# ---------- pass 1: conv-as-matmul (MXU, bf16 in / f32 acc) + per-tile channel stats ----------
def _matmul_stats_kernel(p_ref, w_ref, y_ref, stats_ref):
    y = jnp.dot(p_ref[...], w_ref[...], preferred_element_type=jnp.float32)
    y_ref[...] = y
    s_sum = jnp.sum(y, axis=0, keepdims=True)          # (1, Cout_p)
    s_sq = jnp.sum(y * y, axis=0, keepdims=True)       # (1, Cout_p)
    stats_ref[0] = jnp.concatenate([s_sum, s_sq], axis=0)


# ---------- pass 2: fused BN (scale/shift) + ReLU ----------
def _bn_relu_kernel(y_ref, scale_ref, shift_ref, o_ref):
    o_ref[...] = jnp.maximum(y_ref[...] * scale_ref[...] + shift_ref[...], 0.0)


def block_forward(x_ncdhw, w, b, gamma, beta, downsample, *, tm=512):
    """x_ncdhw: (N, Cin, D, H, W); w: (Cout, Cin, 3, 3, 3); b/gamma/beta: (Cout,)."""
    del b  # conv bias is exactly cancelled by the training-mode BatchNorm mean subtraction
    stride = 2 if downsample else 1
    N, Cin, D, H, W = x_ncdhw.shape
    Cout = w.shape[0]

    # ---- glue (pure JAX): NCDHW -> NDHWC, zero pad, im2col patch extraction ----
    # TODO(synk): stream im2col per M-tile inside the kernel (manual DMA from the padded
    # NDHWC input) instead of materializing the 27x-expanded patch matrix in HBM.
    x_cl = jnp.transpose(x_ncdhw, (0, 2, 3, 4, 1))                 # N, D, H, W, Cin
    xp = jnp.pad(x_cl, ((0, 0), (1, 1), (1, 1), (1, 1), (0, 0)))
    Do = (D + 2 - 3) // stride + 1
    Ho = (H + 2 - 3) // stride + 1
    Wo = (W + 2 - 3) // stride + 1

    taps = []
    for kd in range(3):
        for kh in range(3):
            for kw in range(3):
                t = lax.slice(
                    xp,
                    (0, kd, kh, kw, 0),
                    (N,
                     kd + stride * (Do - 1) + 1,
                     kh + stride * (Ho - 1) + 1,
                     kw + stride * (Wo - 1) + 1,
                     Cin),
                    (1, stride, stride, stride, 1))
                taps.append(t)                                     # (N, Do, Ho, Wo, Cin)
    M = N * Do * Ho * Wo
    K = 27 * Cin
    # patch column ordering = (kd, kh, kw, ci)
    patches = jnp.stack(taps, axis=-2).reshape(M, K)

    # ---- pad to lane/sublane-friendly shapes; MXU inputs in bf16 ----
    K_p = _round_up(K, LANE)
    Cout_p = _round_up(Cout, LANE)
    TM = min(tm, _round_up(M, SUBLANE))
    # keep double-buffered (TM,K_p) bf16 + (TM,Cout_p) f32 tiles comfortably inside VMEM
    while TM > SUBLANE and 2 * (TM * K_p * 2 + TM * Cout_p * 4) > 24 * 1024 * 1024:
        TM = _round_up(max(TM // 2, SUBLANE), SUBLANE)
    M_p = _round_up(M, TM)
    n_tiles = M_p // TM

    patches = jnp.pad(patches, ((0, M_p - M), (0, K_p - K))).astype(jnp.bfloat16)
    # weight matrix with matching (kd, kh, kw, ci) -> co ordering, zero-padded
    w_mat = jnp.transpose(w, (2, 3, 4, 1, 0)).reshape(K, Cout)
    w_mat = jnp.pad(w_mat, ((0, K_p - K), (0, Cout_p - Cout))).astype(jnp.bfloat16)

    # ---- pass 1: tiled matmul + per-tile channel sum / sum-of-squares ----
    y_flat, stats = pl.pallas_call(
        _matmul_stats_kernel,
        out_shape=(jax.ShapeDtypeStruct((M_p, Cout_p), jnp.float32),
                   jax.ShapeDtypeStruct((n_tiles, 2, Cout_p), jnp.float32)),
        grid=(n_tiles,),
        in_specs=[
            pl.BlockSpec((TM, K_p), lambda i: (i, 0)),
            pl.BlockSpec((K_p, Cout_p), lambda i: (0, 0)),
        ],
        out_specs=(
            pl.BlockSpec((TM, Cout_p), lambda i: (i, 0)),
            pl.BlockSpec((1, 2, Cout_p), lambda i: (i, 0, 0)),
        ),
        compiler_params=pltpu.CompilerParams(
            dimension_semantics=("parallel",),
            vmem_limit_bytes=VMEM_LIMIT),
    )(patches, w_mat)

    # ---- tiny cross-tile stats reduction + fold BN affine into one scale/shift ----
    s_sum = jnp.sum(stats[:, 0, :], axis=0)                        # (Cout_p,)
    s_sq = jnp.sum(stats[:, 1, :], axis=0)                         # (Cout_p,)
    mean = s_sum / M                                               # padded rows are exact zeros
    var = jnp.maximum(s_sq / M - mean * mean, 0.0)                 # biased variance (PyTorch BN)
    gamma_p = jnp.pad(gamma.astype(jnp.float32), (0, Cout_p - Cout))
    beta_p = jnp.pad(beta.astype(jnp.float32), (0, Cout_p - Cout))
    scale_v = gamma_p * lax.rsqrt(var + BN_EPS)
    shift_v = beta_p - mean * scale_v
    scale = scale_v.reshape(1, Cout_p)
    shift = shift_v.reshape(1, Cout_p)

    # ---- pass 2: normalize + affine + ReLU, lane-dense stores ----
    out_flat = pl.pallas_call(
        _bn_relu_kernel,
        out_shape=jax.ShapeDtypeStruct((M_p, Cout_p), jnp.float32),
        grid=(n_tiles,),
        in_specs=[
            pl.BlockSpec((TM, Cout_p), lambda i: (i, 0)),
            pl.BlockSpec((1, Cout_p), lambda i: (0, 0)),
            pl.BlockSpec((1, Cout_p), lambda i: (0, 0)),
        ],
        out_specs=pl.BlockSpec((TM, Cout_p), lambda i: (i, 0)),
        compiler_params=pltpu.CompilerParams(
            dimension_semantics=("parallel",),
            vmem_limit_bytes=VMEM_LIMIT),
    )(y_flat, scale, shift)

    out = out_flat[:M, :Cout].reshape(N, Do, Ho, Wo, Cout)
    # single boundary transpose back to the module's NCDHW contract
    return jnp.transpose(out, (0, 4, 1, 2, 3))


def block_reference(x, w, b, gamma, beta, downsample):
    """Pure-JAX reference replicating the PyTorch forward (training-mode BN), all f32."""
    stride = (2, 2, 2) if downsample else (1, 1, 1)
    y = lax.conv_general_dilated(
        x, w, window_strides=stride, padding=[(1, 1)] * 3,
        dimension_numbers=('NCDHW', 'OIDHW', 'NCDHW'))
    y = y + b.reshape(1, -1, 1, 1, 1)
    mean = jnp.mean(y, axis=(0, 2, 3, 4), keepdims=True)
    var = jnp.mean((y - mean) ** 2, axis=(0, 2, 3, 4), keepdims=True)
    yh = (y - mean) * lax.rsqrt(var + BN_EPS)
    return jnp.maximum(yh * gamma.reshape(1, -1, 1, 1, 1) + beta.reshape(1, -1, 1, 1, 1), 0.0)


if __name__ == "__main__":
    key = jax.random.PRNGKey(0)
    N, Cin, Cout, D, H, W = 2, 4, 8, 8, 8, 8

    kx, kw, kb = jax.random.split(key, 3)
    x = jax.random.normal(kx, (N, Cin, D, H, W), dtype=jnp.float32)
    w = 0.1 * jax.random.normal(kw, (Cout, Cin, 3, 3, 3), dtype=jnp.float32)
    b = 0.05 * jax.random.normal(kb, (Cout,), dtype=jnp.float32)
    gamma = jnp.ones((Cout,), dtype=jnp.float32)
    beta = jnp.zeros((Cout,), dtype=jnp.float32)

    for downsample in (False, True):
        out = jax.block_until_ready(block_forward(x, w, b, gamma, beta, downsample))
        ref = jax.block_until_ready(block_reference(x, w, b, gamma, beta, downsample))
        assert out.shape == ref.shape, (out.shape, ref.shape)
        # tolerance accounts for bf16 MXU inputs (f32 accumulation, f32 BN/epilogue)
        assert jnp.allclose(out, ref, atol=3e-2, rtol=3e-2), float(jnp.max(jnp.abs(out - ref)))

    print("KERNEL_OK")
</pallas_src>

<mosaic_0001>
module attributes {stable_mosaic.version = 11 : i64} {
  func.func @_matmul_stats_kernel(%arg0: i32, %arg1: memref<512x128xbf16, #tpu.memory_space<vmem>>, %arg2: memref<128x128xbf16, #tpu.memory_space<vmem>>, %arg3: memref<512x128xf32, #tpu.memory_space<vmem>>, %arg4: memref<1x2x128xf32, #tpu.memory_space<vmem>>) attributes {dimension_semantics = [#tpu.dimension_semantics<parallel>], iteration_bounds = array<i64: 2>, scalar_prefetch = 0 : i64, scratch_operands = 0 : i64, tpu.core_type = #tpu.core_type<tc>, window_params = [{transform_indices = @transform_0, window_bounds = array<i64: 512, 128>}, {pipeline_mode = #tpu.pipeline_mode<synchronous>, transform_indices = @transform_1, window_bounds = array<i64: 128, 128>}, {transform_indices = @transform_2, window_bounds = array<i64: 512, 128>}, {transform_indices = @transform_3, window_bounds = array<i64: 1, 2, 128>}]} {
    %c0 = arith.constant 0 : index
    %c0_0 = arith.constant 0 : index
    %0 = vector.load %arg1[%c0, %c0_0] : memref<512x128xbf16, #tpu.memory_space<vmem>>, vector<512x128xbf16>
    %c0_1 = arith.constant 0 : index
    %c0_2 = arith.constant 0 : index
    %1 = vector.load %arg2[%c0_1, %c0_2] : memref<128x128xbf16, #tpu.memory_space<vmem>>, vector<128x128xbf16>
    %cst = arith.constant dense<0.000000e+00> : vector<512x128xf32>
    %2 = tpu.matmul %0, %1, %cst {dimension_numbers = #tpu.dot_dimension_numbers<[1], [0], [0], [1], [0, 0, 1, 1], [], []>} : vector<512x128xbf16>, vector<128x128xbf16>, vector<512x128xf32> -> vector<512x128xf32>
    %c0_3 = arith.constant 0 : index
    %c0_4 = arith.constant 0 : index
    %3 = vector.load %arg3[%c0_3, %c0_4] : memref<512x128xf32, #tpu.memory_space<vmem>>, vector<512x128xf32>
    tpu.vector_store %arg3[%c0_3, %c0_4], %2 {strides = array<i32>} : memref<512x128xf32, #tpu.memory_space<vmem>>, vector<512x128xf32>,
    %cst_5 = arith.constant dense<0.000000e+00> : vector<128xf32>
    %4 = vector.multi_reduction <add>, %2, %cst_5 [0] : vector<512x128xf32> to vector<128xf32>
    %5 = vector.shape_cast %4 : vector<128xf32> to vector<1x128xf32>
    %6 = arith.mulf %2, %2 : vector<512x128xf32>
    %cst_6 = arith.constant dense<0.000000e+00> : vector<128xf32>
    %7 = vector.multi_reduction <add>, %6, %cst_6 [0] : vector<512x128xf32> to vector<128xf32>
    %8 = vector.shape_cast %7 : vector<128xf32> to vector<1x128xf32>
    %9 = tpu.concatenate %5, %8 in 0 : vector<1x128xf32>, vector<1x128xf32> -> vector<2x128xf32>
    %c0_7 = arith.constant 0 : index
    %c0_8 = arith.constant 0 : index
    %c0_9 = arith.constant 0 : index
    %10 = vector.load %arg4[%c0_7, %c0_8, %c0_9] : memref<1x2x128xf32, #tpu.memory_space<vmem>>, vector<1x2x128xf32>
    %11 = vector.shape_cast %10 : vector<1x2x128xf32> to vector<2x128xf32>
    %12 = vector.shape_cast %9 : vector<2x128xf32> to vector<1x2x128xf32>
    tpu.vector_store %arg4[%c0_7, %c0_8, %c0_9], %12 {strides = array<i32>} : memref<1x2x128xf32, #tpu.memory_space<vmem>>, vector<1x2x128xf32>,
    return
  }
  func.func @transform_0(%arg0: i32) -> (i32, i32) {
    %c0_i32 = arith.constant 0 : i32
    %c0_i32_0 = arith.constant 0 : i32
    return %arg0, %c0_i32 : i32, i32
  }
  func.func @transform_1(%arg0: i32) -> (i32, i32) {
    %c0_i32 = arith.constant 0 : i32
    %c0_i32_0 = arith.constant 0 : i32
    %c0_i32_1 = arith.constant 0 : i32
    return %c0_i32, %c0_i32_0 : i32, i32
  }
  func.func @transform_2(%arg0: i32) -> (i32, i32) {
    %c0_i32 = arith.constant 0 : i32
    %c0_i32_0 = arith.constant 0 : i32
    return %arg0, %c0_i32 : i32, i32
  }
  func.func @transform_3(%arg0: i32) -> (i32, i32, i32) {
    %c0_i32 = arith.constant 0 : i32
    %c0_i32_0 = arith.constant 0 : i32
    %c0_i32_1 = arith.constant 0 : i32
    return %arg0, %c0_i32, %c0_i32_0 : i32, i32, i32
  }
}

</mosaic_0001>

<bundles_post_ra>
// kernel: tpu_custom_call.1
= control target key start
LH: loop header
LB: loop body
LE: loop exit
PB: predicated region body
PF: predicated region fallthrough
CT: control target
= control target key end

     0   :  { %9 = vsyncpa [#allocation3], 0  ;;  %s2229_s0 = inlined_call_operand.hbm [shape: bf16[1024,128], index: 0, kind: input, shape index: {}]   ;;  %s2230_s1 = inlined_call_operand.hbm [shape: bf16[128,128], index: 1, kind: input, shape index: {}]   ;;  %s2231_s2 = inlined_call_operand.hbm [shape: f32[1024,128], index: 2, kind: output, shape index: {0}]   ;;  %s2232_s3 = inlined_call_operand.hbm [shape: f32[2,2,128], index: 3, kind: output, shape index: {1}]  }
   0x1   :  { %11 = vsyncpa [#allocation3 + $0x1], 0 }
   0x2   :  { %12 = vsyncpa [#allocation6], 0 }
   0x3   :  { %13 = vsyncpa [#allocation4], 0 }
   0x4   :  { %15 = vsyncpa [#allocation4 + $0x1], 0 }
   0x5   :  { %16 = vsyncpa [#allocation9], 0 }
   0x6   :  { %18 = vsyncpa [#allocation9 + $0x1], 0  ;;  %s1728_s12 = smov 0   ;;  %s1730_s13 = smov 0  }
   0x7   :  { %s1732_s14 = smov 0   ;;  %s1734_s15 = smov 0  }
   0x8 LB: > { %s1749_s16 = sadd.s32 4294967295, %s1698_s15   ;;  %s1243_s17 = sadd.s32 4294967294, %s1698_s15   ;;  %s1698_s15 = sphi %s1734_s15, %s2254_s15   ;;  %s1694_s14 = sphi %s1732_s14, %s2253_s14   ;;  %s1690_s13 = sphi %s1730_s13, %s2252_s13   ;;  %s1686_s12 = sphi %s1728_s12, %s2251_s12  }
   0x9   : > { %p44_p0 = scmp.ne.s32.totalorder %s1690_s13, %s1686_s12  ;;  %p2233_p1 = scmp.eq.s32.totalorder %s1749_s16, 0 }
   0xa   : > { %p95_p3 = scmp.eq.s32.totalorder %s1243_s17, 1  ;;  %p1244_p5 = scmp.ge.s32.totalorder %s1698_s15, 1 }
   0xb   : > { %p1758_p4 = por %p2233_p1, %p44_p0  ;;  %p128_p7 = scmp.lt.s32.totalorder %s1698_s15, 3 }
   0xc   : > { %p1763_p6 = por %p95_p3, %p44_p0  ;;  %s1700_s21 = smov [#allocation5]  }
   0xd   : > { %s2237_s18 = scalar_select %p1758_p4, 1, 0 }
   0xe   : > { %s2238_s19 = scalar_select %p1763_p6, 1, 0 }
   0xf   : > { %p1768_p8 = pnand %p1244_p5, %p128_p7  ;;  %s140_s22 = sshll.u32 %s1700_s21, 4  ;;  %s141_s22 = int_to_ptr.vmem [resolvable:$true] %s140_s22 }
  0x10   : > { %s1782_s24 = sadd.s32 1, %s1698_s15   ;;  %s31_s25 = sadd.s32 1, %s1694_s14 }
  0x11   : > { %s2239_s20 = scalar_select %p1768_p8, 1, 0 }
  0x12   : > { %p1450_p9 = pneg %p1768_p8  ;;  %s28_s26 = ssub.s32 %s1698_s15, %s1782_s24 }
  0x13   : > { %s1557_s27 = scalar_lea.vmem %s141_s22, 1024  ;;  %p1565_p5 = scmp.lt.s32.totalorder %s141_s22, %s141_s22 }
  0x14   : > { %p1777_p11 = pnand %p1450_p9, %p2233_p1  ;;  %p1558_p13 = scmp.ne.s32.totalorder %s141_s22, %s1557_s27 }
  0x15   : > { %p1566_p7 = scmp.lt.s32.totalorder %s1557_s27, %s1557_s27 }
  0x16   : > { %p1548_p12 = pneg %p1777_p11 }
  0x17   : > { %p1567_p10 = por %p1566_p7, %p1565_p5 }
  0x18   : > { %p1560_p0 = pnand %p1558_p13, %p1548_p12 }
  0x1a   : > { %p1561_p3 = pneg %p1560_p0 }
  0x1c   : > { %p1568_p2 = pnand %p1567_p10, %p1561_p3 }
  0x1e   : > { %1571 = shalt.err (!%p1568_p2)
}
  0x1f   : > { %s1701_s28 = smov 64   ;;  %s1702_s29 = smov 4  }
  0x20   : > { %1453 = dma.hbm_to_vmem [thread:$0]  (!%p1777_p11), %s2230_s1, 1024, %s141_s22, [#allocation6], %s1701_s28, %s1701_s28, %s1702_s29  }
  0x21   : > { %p29_p2 = scmp.eq.s32.totalorder %s28_s26, 0  ;;  %p38_p9 = scmp.ne.s32.totalorder %s1694_s14, %s1690_s13 }
  0x22   : > { %p39_p10 = scmp.eq.s32.totalorder %s1698_s15, 0  ;;  %p1466_p12 = scmp.lt.s32.totalorder %s1698_s15, 2 }
  0x23   : > { %s1802_s5 = scalar_select %p29_p2, %s1694_s14, %s31_s25  }
  0x24   : > { %p40_p13 = por %p39_p10, %p38_p9  ;;  %p2241_p0 = scmp.eq.s32.totalorder %s1749_s16, 1 }
  0x25   : > { %s154_s7 = sand.u32 1, %s1694_s14   ;;  %s1302_s8 = sshll.u32 %s1698_s15, 12 }
  0x26   : > { %p1806_p3 = por %p2241_p0, %p38_p9  ;;  %s1247_s9 = sshll.u32 %s154_s7, 8 }
  0x27   : > { %s1815_s17 = scalar_lea.hbm %s2229_s0, %s1302_s8  ;;  %s158_s21 = scalar_lea.vmem [#allocation2], %s1247_s9 }
  0x28   : > { %s2242_s6 = scalar_select %p1806_p3, 1, 0 }
  0x29   : > { %s165_s22 = sshll.u32 %s158_s21, 4  ;;  %p1817_p11 = pnand %p1466_p12, %p40_p13  ;;  %s1821_s22 = int_to_ptr.vmem [resolvable:$true] %s165_s22 }
  0x2a   : > { %s1823_s25 = scalar_lea.sflag [#allocation3], %s154_s7  ;;  %s1572_s26 = scalar_lea.hbm %s1815_s17, 4096 }
  0x2b   : > { %p1573_p5 = scmp.ne.s32.totalorder %s1815_s17, %s1572_s26  ;;  %p1574_p7 = pneg %p1817_p11 }
  0x2c   : > { %s1577_s4 = scalar_lea.hbm %s2229_s0, 8192  ;;  %p1578_p10 = scmp.lt.s32.totalorder %s1815_s17, %s2229_s0 }
  0x2d   : > { %p1575_p2 = pnand %p1574_p7, %p1573_p5  ;;  %p1579_p12 = scmp.lt.s32.totalorder %s1577_s4, %s1572_s26 }
  0x2f   : > { %p1576_p9 = pneg %p1575_p2  ;;  %p1580_p13 = por %p1579_p12, %p1578_p10 }
  0x31   : > { %p1581_p0 = pnand %p1580_p13, %p1576_p9 }
  0x33   : > { %1584 = shalt.err (!%p1581_p0)
}
  0x34   : > { %s1585_s7 = scalar_lea.vmem %s1821_s22, 4096  ;;  %s1703_s10 = smov [#allocation2]  }
  0x35   : > { %p1586_p1 = scmp.ne.s32.totalorder %s1821_s22, %s1585_s7  ;;  %s1590_s11 = sshll.u32 %s1703_s10, 4  ;;  %s1591_s11 = int_to_ptr.vmem [resolvable:$false] %s1590_s11 }
  0x36   : > { %s1592_s21 = scalar_lea.vmem %s1591_s11, 8192  ;;  %p1593_p2 = scmp.lt.s32.totalorder %s1821_s22, %s1591_s11 }
  0x37   : > { %p1588_p6 = pnand %p1586_p1, %p1574_p7  ;;  %p1594_p3 = scmp.lt.s32.totalorder %s1592_s21, %s1585_s7 }
  0x39   : > { %p1589_p5 = pneg %p1588_p6  ;;  %p1595_p4 = por %p1594_p3, %p1593_p2 }
  0x3b   : > { %p1596_p8 = pnand %p1595_p4, %p1589_p5 }
  0x3d   : > { %1599 = shalt.err (!%p1596_p8)
}
  0x3e   : > { %1457 = dma.hbm_to_vmem [thread:$0]  (!%p1817_p11), %s1815_s17, 4096, %s1821_s22, %s1823_s25, %s1701_s28, %s1701_s28, %s1702_s29  }
  0x3f   : > { %p2244_p1 = scmp.ne.s32.totalorder %s2239_s20, 0 }
  0x40   : > { %s1850_s26 = sand.u32 (!%p2244_p1), 1, %s1690_s13   ;;  %p2245_p4 = scmp.ne.s32.totalorder (!%p2244_p1), %s2237_s18, 0 }
  0x41   : > { %177 = sbr.rel (%p2244_p1) target bundleno = 470 (0x1d6), region = 28  ;;  %s1251_s27 = sshll.u32 (!%p2244_p1), %s1850_s26, 8 }
  0x42   : > { %s180_s30 = scalar_lea.sflag (!%p2244_p1), [#allocation3], %s1850_s26  ;;  %s1854_s4 = scalar_lea.vmem (!%p2244_p1), [#allocation2], %s1251_s27 }
  0x46   : > { %1669 = dma.done.wait (%p2245_p4), %s180_s30, 4096  }
  0x47   : > { %1671 = vsyncadd (%p2245_p4), %s180_s30, 4294963200  ;;  %p2246_p6 = scmp.eq.s32.totalorder %s1749_s16, 0 }
  0x49   : > { %1673 = dma.done.wait (%p2246_p6), [#allocation6], 1024   ;;  %p2247_p8 = pmov %p2246_p6 }
  0x4a   : > { %v1506_v0 = vld [vmem:[#allocation5 + $0x38] sm:$0xff]   ;;  %v1507_v1 = vld [vmem:[#allocation5 + $0x30] sm:$0xff]   ;;  %v1508_v2 = vld [vmem:[#allocation5 + $0x28] sm:$0xff]   ;;  %s1253_s18 = sshll.u32 %s1850_s26, 9  ;;  %s1303_s28 = sshll.u32 %s1749_s16, 13 }
  0x4b   : > { %1675 = vsyncadd (%p2247_p8), [#allocation6], 4294966272  ;;  %1344 = vmatprep.subr.bf16.mxu0 %v1506_v0  ;;  %1424 = vmatprep.subr.bf16.mxu1 %v1506_v0  ;;  %v1509_v3 = vld [vmem:[#allocation5 + $0x20] sm:$0xff]   ;;  %v1510_v5 = vld [vmem:[#allocation5 + $0x18] sm:$0xff]   ;;  %s1899_s20 = scalar_lea.vmem [#allocation7], %s1253_s18  ;;  %s2056_s23 = scalar_lea.hbm %s2231_s2, %s1303_s28 }
  0x4c   : > { %1345 = vmatpush3.bf16.msra.mxu0 %v1506_v0  ;;  %1432 = vmatpush3.bf16.msra.mxu1 %v1506_v0  ;;  %v1514_v4 = vld [vmem:[%s1854_s4] sm:$0xff]   ;;  %v1511_v6 = vld [vmem:[#allocation5 + $0x10] sm:$0xff]   ;;  %v1512_v7 = vld [vmem:[#allocation5 + $0x8] sm:$0xff]   ;;  %s1115_s29 = sshll.u32 %s1899_s20, 4  ;;  %s1097_s25 = scalar_lea.sflag [#allocation4], %s1850_s26  ;;  %s2058_s29 = int_to_ptr.vmem [resolvable:$true] %s1115_s29 }
  0x4d   : > { %1346 = vmatprep.subr.bf16.mxu0 %v1507_v1  ;;  %1425 = vmatprep.subr.bf16.mxu1 %v1507_v1  ;;  %v1513_v8 = vld [vmem:[#allocation5] sm:$0xff]   ;;  %v1515_v10 = vld [vmem:[%s1854_s4 + $0x8] sm:$0xff]   ;;  %v1516_v11 = vld [vmem:[%s1854_s4 + $0x10] sm:$0xff]   ;;  %s1600_s8 = scalar_lea.vmem %s2058_s29, 8192  ;;  %p2248_p11 = scmp.ne.s32.totalorder %s2242_s6, 0 }
  0x4e   : > { %1360 = vmatprep.mubr.bf16.mxu0 %v1514_v4  ;;  %v1530_v9 = vld [vmem:[%s1854_s4 + $0x80] sm:$0xff]   ;;  %v1531_v12 = vld [vmem:[%s1854_s4 + $0x88] sm:$0xff]   ;;  %v1532_v13 = vld [vmem:[%s1854_s4 + $0x90] sm:$0xff]   ;;  %p1601_p3 = scmp.ne.s32.totalorder %s2058_s29, %s1600_s8  ;;  %s1704_s9 = smov [#allocation7]  }
  0x4f   : > { %1392 = vmatprep.mubr.bf16.mxu1 %v1530_v9  ;;  %v1517_v14 = vld [vmem:[%s1854_s4 + $0x18] sm:$0xff]   ;;  %v1518_v15 = vld [vmem:[%s1854_s4 + $0x20] sm:$0xff]   ;;  %v1519_v18 = vld [vmem:[%s1854_s4 + $0x28] sm:$0xff]   ;;  %s1604_s7 = sshll.u32 %s1704_s9, 4  ;;  %s1605_s7 = int_to_ptr.vmem [resolvable:$false] %s1604_s7 }
  0x50   : > { %1347 = vmatpush3.bf16.msra.mxu0 %v1507_v1  ;;  %1433 = vmatpush3.bf16.msra.mxu1 %v1507_v1  ;;  %v1533_v16 = vld [vmem:[%s1854_s4 + $0x98] sm:$0xff]   ;;  %v1534_v17 = vld [vmem:[%s1854_s4 + $0xa0] sm:$0xff]   ;;  %v1535_v19 = vld [vmem:[%s1854_s4 + $0xa8] sm:$0xff]   ;;  %p1602_p7 = pnand %p1601_p3, %p2248_p11  ;;  %s1606_s10 = scalar_lea.vmem %s1605_s7, 16384 }
  0x51   : > { %1348 = vmatprep.subr.bf16.mxu0 %v1508_v2  ;;  %1426 = vmatprep.subr.bf16.mxu1 %v1508_v2  ;;  %v1520_v20 = vld [vmem:[%s1854_s4 + $0x30] sm:$0xff]   ;;  %v1521_v22 = vld [vmem:[%s1854_s4 + $0x38] sm:$0xff]   ;;  %v1522_v24 = vld [vmem:[%s1854_s4 + $0x40] sm:$0xff]   ;;  %p1607_p10 = scmp.lt.s32.totalorder %s2058_s29, %s1605_s7  ;;  %p1608_p12 = scmp.lt.s32.totalorder %s1606_s10, %s1600_s8 }
  0x52   : > { %v1536_v21 = vld [vmem:[%s1854_s4 + $0xb0] sm:$0xff]   ;;  %v1537_v23 = vld [vmem:[%s1854_s4 + $0xb8] sm:$0xff]   ;;  %v1538_v25 = vld [vmem:[%s1854_s4 + $0xc0] sm:$0xff]   ;;  %p1603_p9 = pneg %p1602_p7 }
  0x53   : > { %v1523_v26 = vld [vmem:[%s1854_s4 + $0x48] sm:$0xff]   ;;  %v1524_v28 = vld [vmem:[%s1854_s4 + $0x50] sm:$0xff]   ;;  %v1525_v30 = vld [vmem:[%s1854_s4 + $0x58] sm:$0xff]   ;;  %p1609_p13 = por %p1608_p12, %p1607_p10 }
  0x54   : > { %1349 = vmatpush3.bf16.msra.mxu0 %v1508_v2  ;;  %1434 = vmatpush3.bf16.msra.mxu1 %v1508_v2  ;;  %v1539_v27 = vld [vmem:[%s1854_s4 + $0xc8] sm:$0xff]   ;;  %v1540_v29 = vld [vmem:[%s1854_s4 + $0xd0] sm:$0xff]   ;;  %v1541_v31 = vld [vmem:[%s1854_s4 + $0xd8] sm:$0xff]  }
  0x55   : > { %1350 = vmatprep.subr.bf16.mxu0 %v1509_v3  ;;  %1427 = vmatprep.subr.bf16.mxu1 %v1509_v3  ;;  %v1526_v32 = vld [vmem:[%s1854_s4 + $0x60] sm:$0xff]   ;;  %v1527_v34 = vld [vmem:[%s1854_s4 + $0x68] sm:$0xff]   ;;  %v1528_v36 = vld [vmem:[%s1854_s4 + $0x70] sm:$0xff]   ;;  %p1610_p0 = pnand %p1609_p13, %p1603_p9 }
  0x56   : > { %v1542_v33 = vld [vmem:[%s1854_s4 + $0xe0] sm:$0xff]   ;;  %v1543_v35 = vld [vmem:[%s1854_s4 + $0xe8] sm:$0xff]   ;;  %v1544_v37 = vld [vmem:[%s1854_s4 + $0xf0] sm:$0xff]  }
  0x57   : > { %v1529_v38 = vld [vmem:[%s1854_s4 + $0x78] sm:$0xff]  }
  0x58   : > { %1351 = vmatpush3.bf16.msra.mxu0 %v1509_v3  ;;  %1435 = vmatpush3.bf16.msra.mxu1 %v1509_v3  ;;  %v1545_v39 = vld [vmem:[%s1854_s4 + $0xf8] sm:$0xff]  }
  0x59   : > { %1352 = vmatprep.subr.bf16.mxu0 %v1510_v5  ;;  %1428 = vmatprep.subr.bf16.mxu1 %v1510_v5 }
  0x5c   : > { %1353 = vmatpush3.bf16.msra.mxu0 %v1510_v5  ;;  %1436 = vmatpush3.bf16.msra.mxu1 %v1510_v5 }
  0x5d   : > { %1354 = vmatprep.subr.bf16.mxu0 %v1511_v6  ;;  %1429 = vmatprep.subr.bf16.mxu1 %v1511_v6 }
  0x60   : > { %1355 = vmatpush3.bf16.msra.mxu0 %v1511_v6  ;;  %1437 = vmatpush3.bf16.msra.mxu1 %v1511_v6 }
  0x61   : > { %1356 = vmatprep.subr.bf16.mxu0 %v1512_v7  ;;  %1430 = vmatprep.subr.bf16.mxu1 %v1512_v7 }
  0x64   : > { %1357 = vmatpush3.bf16.msra.mxu0 %v1512_v7  ;;  %1438 = vmatpush3.bf16.msra.mxu1 %v1512_v7 }
  0x65   : > { %1358 = vmatprep.subr.bf16.mxu0 %v1513_v8  ;;  %1431 = vmatprep.subr.bf16.mxu1 %v1513_v8 }
  0x68   : > { %1359 = vmatpush3.bf16.msra.mxu0 %v1513_v8  ;;  %1439 = vmatpush3.bf16.msra.mxu1 %v1513_v8 }
  0x6b   : > { %1361 = vmatmul.mubr.bf16.vlgmr.msra.gmra.mxu0 %v1515_v10  ;;  %1393 = vmatmul.mubr.bf16.vlgmr.msra.gmra.mxu1 %v1531_v12 }
  0x6c   : > { %1364 = vmatprep.mubr.bf16.mxu0 %v1516_v11  ;;  %1396 = vmatprep.mubr.bf16.mxu1 %v1532_v13 }
  0x73   : > { %1365 = vmatmul.mubr.bf16.gmra.mxu0 %v1517_v14  ;;  %1397 = vmatmul.mubr.bf16.gmra.mxu1 %v1533_v16 }
  0x74   : > { %1368 = vmatprep.mubr.bf16.mxu0 %v1518_v15  ;;  %1400 = vmatprep.mubr.bf16.mxu1 %v1534_v17 }
  0x7b   : > { %1369 = vmatmul.mubr.bf16.gmra.mxu0 %v1519_v18  ;;  %1401 = vmatmul.mubr.bf16.gmra.mxu1 %v1535_v19 }
  0x7c   : > { %1372 = vmatprep.mubr.bf16.mxu0 %v1520_v20  ;;  %1404 = vmatprep.mubr.bf16.mxu1 %v1536_v21 }
  0x83   : > { %1373 = vmatmul.mubr.bf16.gmra.mxu0 %v1521_v22  ;;  %1405 = vmatmul.mubr.bf16.gmra.mxu1 %v1537_v23 }
  0x84   : > { %1376 = vmatprep.mubr.bf16.mxu0 %v1522_v24  ;;  %1408 = vmatprep.mubr.bf16.mxu1 %v1538_v25 }
  0x8b   : > { %1377 = vmatmul.mubr.bf16.gmra.mxu0 %v1523_v26  ;;  %1409 = vmatmul.mubr.bf16.gmra.mxu1 %v1539_v27 }
  0x8c   : > { %1380 = vmatprep.mubr.bf16.mxu0 %v1524_v28  ;;  %1412 = vmatprep.mubr.bf16.mxu1 %v1540_v29 }
  0x93   : > { %1381 = vmatmul.mubr.bf16.gmra.mxu0 %v1525_v30  ;;  %1413 = vmatmul.mubr.bf16.gmra.mxu1 %v1541_v31 }
  0x94   : > { %1384 = vmatprep.mubr.bf16.mxu0 %v1526_v32  ;;  %1416 = vmatprep.mubr.bf16.mxu1 %v1542_v33 }
  0x9b   : > { %1385 = vmatmul.mubr.bf16.gmra.mxu0 %v1527_v34  ;;  %1417 = vmatmul.mubr.bf16.gmra.mxu1 %v1543_v35 }
  0x9c   : > { %1388 = vmatprep.mubr.bf16.mxu0 %v1528_v36  ;;  %1420 = vmatprep.mubr.bf16.mxu1 %v1544_v37 }
  0xa3   : > { %1389 = vmatmul.mubr.bf16.gmra.mxu0 %v1529_v38  ;;  %1421 = vmatmul.mubr.bf16.gmra.mxu1 %v1545_v39 }
 0x12b   : > { %v1362_v40 = vpop.f32.mrf.mxu0  ;;  %v1897_v41 = vpop.f32.mrf.mxu1 }
 0x12c   : > { %829 = vst [vmem:[%s1899_s20 + $0x10] sm:$0xff] %v1362_v40  ;;  %861 = vst [vmem:[%s1899_s20 + $0x110] sm:$0xff] %v1897_v41  ;;  %v962_v53 = vmul.f32 %v1362_v40, %v1362_v40 }
 0x12d   : > { %v572_v42 = vpop.f32.mrf.mxu0  ;;  %v1904_v43 = vpop.f32.mrf.mxu1 }
 0x12e   : > { %827 = vst [vmem:[%s1899_s20] sm:$0xff] %v572_v42  ;;  %859 = vst [vmem:[%s1899_s20 + $0x100] sm:$0xff] %v1904_v43  ;;  %v960_v48 = vmul.f32 %v572_v42, %v572_v42 }
 0x12f   : > { %v1363_v44 = vpop.f32.mrf.mxu0  ;;  %v1909_v45 = vpop.f32.mrf.mxu1 }
 0x130   : > { %830 = vst [vmem:[%s1899_s20 + $0x18] sm:$0xff] %v1363_v44  ;;  %862 = vst [vmem:[%s1899_s20 + $0x118] sm:$0xff] %v1909_v45  ;;  %v963_v58 = vmul.f32 %v1363_v44, %v1363_v44 }
 0x131   : > { %v575_v46 = vpop.f32.mrf.mxu0  ;;  %v1914_v47 = vpop.f32.mrf.mxu1 }
 0x132   : > { %828 = vst [vmem:[%s1899_s20 + $0x8] sm:$0xff] %v575_v46  ;;  %v891_v49 = vadd.f32 %v575_v46, %v572_v42  ;;  %v961_v50 = vmul.f32 %v575_v46, %v575_v46  ;;  %860 = vst [vmem:[%s1899_s20 + $0x108] sm:$0xff] %v1914_v47 }
 0x133   : > { %v1366_v51 = vpop.f32.mrf.mxu0  ;;  %v1919_v52 = vpop.f32.mrf.mxu1 }
 0x134   : > { %v892_v54 = vadd.f32 %v1362_v40, %v891_v49  ;;  %v1024_v55 = vadd.f32 %v961_v50, %v960_v48  ;;  %833 = vst [vmem:[%s1899_s20 + $0x30] sm:$0xff] %v1366_v51  ;;  %865 = vst [vmem:[%s1899_s20 + $0x130] sm:$0xff] %v1919_v52  ;;  %v966_v9 = vmul.f32 %v1366_v51, %v1366_v51 }
 0x135   : > { %v588_v56 = vpop.f32.mrf.mxu0  ;;  %v1924_v57 = vpop.f32.mrf.mxu1 }
 0x136   : > { %v1025_v59 = vadd.f32 %v1024_v55, %v962_v53  ;;  %831 = vst [vmem:[%s1899_s20 + $0x20] sm:$0xff] %v588_v56  ;;  %v893_v60 = vadd.f32 %v1363_v44, %v892_v54  ;;  %863 = vst [vmem:[%s1899_s20 + $0x120] sm:$0xff] %v1924_v57  ;;  %v964_v0 = vmul.f32 %v588_v56, %v588_v56 }
 0x137   : > { %v1367_v61 = vpop.f32.mrf.mxu0  ;;  %v1929_v62 = vpop.f32.mrf.mxu1 }
 0x138   : > { %v894_v63 = vadd.f32 %v893_v60, %v588_v56  ;;  %v1026_v1 = vadd.f32 %v1025_v59, %v963_v58  ;;  %834 = vst [vmem:[%s1899_s20 + $0x38] sm:$0xff] %v1367_v61  ;;  %866 = vst [vmem:[%s1899_s20 + $0x138] sm:$0xff] %v1929_v62  ;;  %v967_v14 = vmul.f32 %v1367_v61, %v1367_v61 }
 0x139   : > { %v591_v2 = vpop.f32.mrf.mxu0  ;;  %v1934_v3 = vpop.f32.mrf.mxu1 }
 0x13a   : > { %v1027_v4 = vadd.f32 %v1026_v1, %v964_v0  ;;  %832 = vst [vmem:[%s1899_s20 + $0x28] sm:$0xff] %v591_v2  ;;  %v895_v5 = vadd.f32 %v894_v63, %v591_v2  ;;  %v965_v6 = vmul.f32 %v591_v2, %v591_v2  ;;  %864 = vst [vmem:[%s1899_s20 + $0x128] sm:$0xff] %v1934_v3 }
 0x13b   : > { %v1370_v7 = vpop.f32.mrf.mxu0  ;;  %v1939_v8 = vpop.f32.mrf.mxu1 }
 0x13c   : > { %v896_v10 = vadd.f32 %v1366_v51, %v895_v5  ;;  %v1028_v11 = vadd.f32 %v1027_v4, %v965_v6  ;;  %837 = vst [vmem:[%s1899_s20 + $0x50] sm:$0xff] %v1370_v7  ;;  %869 = vst [vmem:[%s1899_s20 + $0x150] sm:$0xff] %v1939_v8  ;;  %v970_v29 = vmul.f32 %v1370_v7, %v1370_v7 }
 0x13d   : > { %v604_v12 = vpop.f32.mrf.mxu0  ;;  %v1944_v13 = vpop.f32.mrf.mxu1 }
 0x13e   : > { %v1029_v15 = vadd.f32 %v1028_v11, %v966_v9  ;;  %835 = vst [vmem:[%s1899_s20 + $0x40] sm:$0xff] %v604_v12  ;;  %v897_v16 = vadd.f32 %v1367_v61, %v896_v10  ;;  %867 = vst [vmem:[%s1899_s20 + $0x140] sm:$0xff] %v1944_v13  ;;  %v968_v20 = vmul.f32 %v604_v12, %v604_v12 }
 0x13f   : > { %v1371_v17 = vpop.f32.mrf.mxu0  ;;  %v1949_v18 = vpop.f32.mrf.mxu1 }
 0x140   : > { %v898_v19 = vadd.f32 %v897_v16, %v604_v12  ;;  %v1030_v21 = vadd.f32 %v1029_v15, %v967_v14  ;;  %838 = vst [vmem:[%s1899_s20 + $0x58] sm:$0xff] %v1371_v17  ;;  %870 = vst [vmem:[%s1899_s20 + $0x158] sm:$0xff] %v1949_v18  ;;  %v971_v34 = vmul.f32 %v1371_v17, %v1371_v17 }
 0x141   : > { %v607_v22 = vpop.f32.mrf.mxu0  ;;  %v1954_v23 = vpop.f32.mrf.mxu1 }
 0x142   : > { %v1031_v24 = vadd.f32 %v1030_v21, %v968_v20  ;;  %836 = vst [vmem:[%s1899_s20 + $0x48] sm:$0xff] %v607_v22  ;;  %v899_v25 = vadd.f32 %v898_v19, %v607_v22  ;;  %v969_v26 = vmul.f32 %v607_v22, %v607_v22  ;;  %868 = vst [vmem:[%s1899_s20 + $0x148] sm:$0xff] %v1954_v23 }
 0x143   : > { %v1374_v27 = vpop.f32.mrf.mxu0  ;;  %v1959_v28 = vpop.f32.mrf.mxu1 }
 0x144   : > { %v900_v30 = vadd.f32 %v1370_v7, %v899_v25  ;;  %v1032_v31 = vadd.f32 %v1031_v24, %v969_v26  ;;  %841 = vst [vmem:[%s1899_s20 + $0x70] sm:$0xff] %v1374_v27  ;;  %873 = vst [vmem:[%s1899_s20 + $0x170] sm:$0xff] %v1959_v28  ;;  %v974_v54 = vmul.f32 %v1374_v27, %v1374_v27 }
 0x145   : > { %v620_v32 = vpop.f32.mrf.mxu0  ;;  %v1964_v33 = vpop.f32.mrf.mxu1 }
 0x146   : > { %v1033_v35 = vadd.f32 %v1032_v31, %v970_v29  ;;  %839 = vst [vmem:[%s1899_s20 + $0x60] sm:$0xff] %v620_v32  ;;  %v901_v36 = vadd.f32 %v1371_v17, %v900_v30  ;;  %871 = vst [vmem:[%s1899_s20 + $0x160] sm:$0xff] %v1964_v33  ;;  %v972_v40 = vmul.f32 %v620_v32, %v620_v32 }
 0x147   : > { %v1375_v37 = vpop.f32.mrf.mxu0  ;;  %v1969_v38 = vpop.f32.mrf.mxu1 }
 0x148   : > { %v902_v39 = vadd.f32 %v901_v36, %v620_v32  ;;  %v1034_v42 = vadd.f32 %v1033_v35, %v971_v34  ;;  %842 = vst [vmem:[%s1899_s20 + $0x78] sm:$0xff] %v1375_v37  ;;  %874 = vst [vmem:[%s1899_s20 + $0x178] sm:$0xff] %v1969_v38  ;;  %v975_v60 = vmul.f32 %v1375_v37, %v1375_v37 }
 0x149   : > { %v623_v44 = vpop.f32.mrf.mxu0  ;;  %v1974_v46 = vpop.f32.mrf.mxu1 }
 0x14a   : > { %v1035_v48 = vadd.f32 %v1034_v42, %v972_v40  ;;  %840 = vst [vmem:[%s1899_s20 + $0x68] sm:$0xff] %v623_v44  ;;  %v903_v49 = vadd.f32 %v902_v39, %v623_v44  ;;  %v973_v50 = vmul.f32 %v623_v44, %v623_v44  ;;  %872 = vst [vmem:[%s1899_s20 + $0x168] sm:$0xff] %v1974_v46 }
 0x14b   : > { %v1378_v51 = vpop.f32.mrf.mxu0  ;;  %v1979_v53 = vpop.f32.mrf.mxu1 }
 0x14c   : > { %v904_v55 = vadd.f32 %v1374_v27, %v903_v49  ;;  %v1036_v56 = vadd.f32 %v1035_v48, %v973_v50  ;;  %845 = vst [vmem:[%s1899_s20 + $0x90] sm:$0xff] %v1378_v51  ;;  %877 = vst [vmem:[%s1899_s20 + $0x190] sm:$0xff] %v1979_v53  ;;  %v978_v15 = vmul.f32 %v1378_v51, %v1378_v51 }
 0x14d   : > { %v636_v58 = vpop.f32.mrf.mxu0  ;;  %v1984_v59 = vpop.f32.mrf.mxu1 }
 0x14e   : > { %v1037_v61 = vadd.f32 %v1036_v56, %v974_v54  ;;  %843 = vst [vmem:[%s1899_s20 + $0x80] sm:$0xff] %v636_v58  ;;  %v905_v63 = vadd.f32 %v1375_v37, %v904_v55  ;;  %875 = vst [vmem:[%s1899_s20 + $0x180] sm:$0xff] %v1984_v59  ;;  %v976_v4 = vmul.f32 %v636_v58, %v636_v58 }
 0x14f   : > { %v1379_v0 = vpop.f32.mrf.mxu0  ;;  %v1989_v1 = vpop.f32.mrf.mxu1 }
 0x150   : > { %v906_v2 = vadd.f32 %v905_v63, %v636_v58  ;;  %v1038_v5 = vadd.f32 %v1037_v61, %v975_v60  ;;  %846 = vst [vmem:[%s1899_s20 + $0x98] sm:$0xff] %v1379_v0  ;;  %878 = vst [vmem:[%s1899_s20 + $0x198] sm:$0xff] %v1989_v1  ;;  %v979_v21 = vmul.f32 %v1379_v0, %v1379_v0 }
 0x151   : > { %v639_v6 = vpop.f32.mrf.mxu0  ;;  %v1994_v7 = vpop.f32.mrf.mxu1 }
 0x152   : > { %v1039_v9 = vadd.f32 %v1038_v5, %v976_v4  ;;  %844 = vst [vmem:[%s1899_s20 + $0x88] sm:$0xff] %v639_v6  ;;  %v907_v10 = vadd.f32 %v906_v2, %v639_v6  ;;  %v977_v11 = vmul.f32 %v639_v6, %v639_v6  ;;  %876 = vst [vmem:[%s1899_s20 + $0x188] sm:$0xff] %v1994_v7 }
 0x153   : > { %v1382_v12 = vpop.f32.mrf.mxu0  ;;  %v1999_v14 = vpop.f32.mrf.mxu1 }
 0x154   : > { %v908_v16 = vadd.f32 %v1378_v51, %v907_v10  ;;  %v1040_v17 = vadd.f32 %v1039_v9, %v977_v11  ;;  %849 = vst [vmem:[%s1899_s20 + $0xb0] sm:$0xff] %v1382_v12  ;;  %881 = vst [vmem:[%s1899_s20 + $0x1b0] sm:$0xff] %v1999_v14  ;;  %v982_v40 = vmul.f32 %v1382_v12, %v1382_v12 }
 0x155   : > { %v652_v19 = vpop.f32.mrf.mxu0  ;;  %v2004_v20 = vpop.f32.mrf.mxu1 }
 0x156   : > { %v1041_v22 = vadd.f32 %v1040_v17, %v978_v15  ;;  %847 = vst [vmem:[%s1899_s20 + $0xa0] sm:$0xff] %v652_v19  ;;  %v909_v24 = vadd.f32 %v1379_v0, %v908_v16  ;;  %879 = vst [vmem:[%s1899_s20 + $0x1a0] sm:$0xff] %v2004_v20  ;;  %v980_v29 = vmul.f32 %v652_v19, %v652_v19 }
 0x157   : > { %v1383_v25 = vpop.f32.mrf.mxu0  ;;  %v2009_v26 = vpop.f32.mrf.mxu1 }
 0x158   : > { %v910_v27 = vadd.f32 %v909_v24, %v652_v19  ;;  %v1042_v30 = vadd.f32 %v1041_v22, %v979_v21  ;;  %850 = vst [vmem:[%s1899_s20 + $0xb8] sm:$0xff] %v1383_v25  ;;  %882 = vst [vmem:[%s1899_s20 + $0x1b8] sm:$0xff] %v2009_v26  ;;  %v983_v50 = vmul.f32 %v1383_v25, %v1383_v25 }
 0x159   : > { %v655_v31 = vpop.f32.mrf.mxu0  ;;  %v2014_v32 = vpop.f32.mrf.mxu1 }
 0x15a   : > { %v1043_v34 = vadd.f32 %v1042_v30, %v980_v29  ;;  %848 = vst [vmem:[%s1899_s20 + $0xa8] sm:$0xff] %v655_v31  ;;  %v911_v35 = vadd.f32 %v910_v27, %v655_v31  ;;  %v981_v36 = vmul.f32 %v655_v31, %v655_v31  ;;  %880 = vst [vmem:[%s1899_s20 + $0x1a8] sm:$0xff] %v2014_v32 }
 0x15b   : > { %v1386_v37 = vpop.f32.mrf.mxu0  ;;  %v2019_v39 = vpop.f32.mrf.mxu1 }
 0x15c   : > { %v912_v42 = vadd.f32 %v1382_v12, %v911_v35  ;;  %v1044_v44 = vadd.f32 %v1043_v34, %v981_v36  ;;  %853 = vst [vmem:[%s1899_s20 + $0xd0] sm:$0xff] %v1386_v37  ;;  %885 = vst [vmem:[%s1899_s20 + $0x1d0] sm:$0xff] %v2019_v39  ;;  %v986_v10 = vmul.f32 %v1386_v37, %v1386_v37 }
 0x15d   : > { %v668_v48 = vpop.f32.mrf.mxu0  ;;  %v2024_v49 = vpop.f32.mrf.mxu1 }
 0x15e   : > { %v1045_v51 = vadd.f32 %v1044_v44, %v982_v40  ;;  %851 = vst [vmem:[%s1899_s20 + $0xc0] sm:$0xff] %v668_v48  ;;  %v913_v54 = vadd.f32 %v1383_v25, %v912_v42  ;;  %883 = vst [vmem:[%s1899_s20 + $0x1c0] sm:$0xff] %v2024_v49  ;;  %v984_v60 = vmul.f32 %v668_v48, %v668_v48 }
 0x15f   : > { %v1387_v55 = vpop.f32.mrf.mxu0  ;;  %v2029_v56 = vpop.f32.mrf.mxu1 }
 0x160   : > { %v914_v58 = vadd.f32 %v913_v54, %v668_v48  ;;  %v1046_v61 = vadd.f32 %v1045_v51, %v983_v50  ;;  %854 = vst [vmem:[%s1899_s20 + $0xd8] sm:$0xff] %v1387_v55  ;;  %886 = vst [vmem:[%s1899_s20 + $0x1d8] sm:$0xff] %v2029_v56  ;;  %v987_v17 = vmul.f32 %v1387_v55, %v1387_v55 }
 0x161   : > { %v671_v63 = vpop.f32.mrf.mxu0  ;;  %v2034_v0 = vpop.f32.mrf.mxu1 }
 0x162   : > { %v1047_v2 = vadd.f32 %v1046_v61, %v984_v60  ;;  %852 = vst [vmem:[%s1899_s20 + $0xc8] sm:$0xff] %v671_v63  ;;  %v915_v4 = vadd.f32 %v914_v58, %v671_v63  ;;  %v985_v5 = vmul.f32 %v671_v63, %v671_v63  ;;  %884 = vst [vmem:[%s1899_s20 + $0x1c8] sm:$0xff] %v2034_v0 }
 0x163   : > { %v1390_v6 = vpop.f32.mrf.mxu0  ;;  %v2039_v9 = vpop.f32.mrf.mxu1 }
 0x164   : > { %v916_v11 = vadd.f32 %v1386_v37, %v915_v4  ;;  %v1048_v12 = vadd.f32 %v1047_v2, %v985_v5  ;;  %857 = vst [vmem:[%s1899_s20 + $0xf0] sm:$0xff] %v1390_v6  ;;  %889 = vst [vmem:[%s1899_s20 + $0x1f0] sm:$0xff] %v2039_v9 }
 0x165   : > { %v684_v15 = vpop.f32.mrf.mxu0  ;;  %v2046_v16 = vpop.f32.mrf.mxu1 }
 0x166   : > { %v1049_v19 = vadd.f32 %v1048_v12, %v986_v10  ;;  %855 = vst [vmem:[%s1899_s20 + $0xe0] sm:$0xff] %v684_v15  ;;  %v917_v21 = vadd.f32 %v1387_v55, %v916_v11  ;;  %887 = vst [vmem:[%s1899_s20 + $0x1e0] sm:$0xff] %v2046_v16  ;;  %v988_v27 = vmul.f32 %v684_v15, %v684_v15 }
 0x167   : > { %v1391_v22 = vpop.f32.mrf.mxu0  ;;  %v2051_v24 = vpop.f32.mrf.mxu1 }
 0x168   : > { %v918_v25 = vadd.f32 %v917_v21, %v684_v15  ;;  %v1050_v29 = vadd.f32 %v1049_v19, %v987_v17  ;;  %858 = vst [vmem:[%s1899_s20 + $0xf8] sm:$0xff] %v1391_v22  ;;  %890 = vst [vmem:[%s1899_s20 + $0x1f8] sm:$0xff] %v2051_v24 }
 0x169   : > { %v687_v30 = vpop.f32.mrf.mxu0  ;;  %v2063_v31 = vpop.f32.mrf.mxu1 }
 0x16a   : > { %v1051_v34 = vadd.f32 %v1050_v29, %v988_v27  ;;  %856 = vst [vmem:[%s1899_s20 + $0xe8] sm:$0xff] %v687_v30  ;;  %v919_v35 = vadd.f32 %v918_v25, %v687_v30  ;;  %v989_v36 = vmul.f32 %v687_v30, %v687_v30  ;;  %888 = vst [vmem:[%s1899_s20 + $0x1e8] sm:$0xff] %v2063_v31 }
 0x16b   : > { %1613 = shalt.err (!%p1610_p0)
}
 0x16c   : > { %s1614_s11 = scalar_lea.hbm %s2056_s23, 8192  ;;  %s1618_s30 = scalar_lea.hbm %s2231_s2, 16384 }
 0x16d   : > { %p1615_p5 = scmp.ne.s32.totalorder %s2056_s23, %s1614_s11  ;;  %p1619_p4 = scmp.lt.s32.totalorder %s2056_s23, %s2231_s2 }
 0x16e   : > { %p1620_p6 = scmp.lt.s32.totalorder %s1618_s30, %s1614_s11 }
 0x16f   : > { %p1616_p2 = pnand %p1615_p5, %p2248_p11 }
 0x170   : > { %p1621_p8 = por %p1620_p6, %p1619_p4 }
 0x171   : > { %p1617_p1 = pneg %p1616_p2 }
 0x173   : > { %p1622_p3 = pnand %p1621_p8, %p1617_p1 }
 0x175   : > { %1625 = shalt.err (!%p1622_p3)
}
 0x176   : > { %s1705_s20 = smov 128   ;;  %s1706_s28 = smov 8   ;;  %v990_v37 = vmul.f32 %v1390_v6, %v1390_v6  ;;  %v920_v40 = vadd.f32 %v1390_v6, %v919_v35  ;;  %v1052_v42 = vadd.f32 %v1051_v34, %v989_v36  ;;  %v991_v44 = vmul.f32 %v1391_v22, %v1391_v22 }
 0x177   : > { %1446 = dma.vmem_to_hbm [thread:$0]  (%p2248_p11), %s2058_s29, 8192, %s2056_s23, %s1097_s25, %s1705_s20, %s1705_s20, %s1706_s28   ;;  %v992_v51 = vmul.f32 %v1904_v43, %v1904_v43  ;;  %v993_v60 = vmul.f32 %v1914_v47, %v1914_v47  ;;  %v994_v63 = vmul.f32 %v1897_v41, %v1897_v41  ;;  %v995_v5 = vmul.f32 %v1909_v45, %v1909_v45 }
 0x178   : > { %v921_v48 = vadd.f32 %v1391_v22, %v920_v40  ;;  %v1053_v50 = vadd.f32 %v1052_v42, %v990_v37  ;;  %v996_v11 = vmul.f32 %v1924_v57, %v1924_v57  ;;  %v997_v17 = vmul.f32 %v1934_v3, %v1934_v3  ;;  %s1254_s29 = sshll.u32 %s1850_s26, 1  ;;  %s1299_s17 = sshll.u32 %s1749_s16, 5 }
 0x179   : > { %v1000_v27 = vmul.f32 %v1944_v13, %v1944_v13  ;;  %v1001_v34 = vmul.f32 %v1954_v23, %v1954_v23  ;;  %v1004_v42 = vmul.f32 %v1964_v33, %v1964_v33  ;;  %s214_s22 = scalar_lea.vmem [#allocation8], %s1254_s29  ;;  %vm1093_vm0 = vcmask 1040384   ;;  %s2192_s9 = scalar_lea.hbm %s2232_s3, %s1299_s17 }
 0x17a   : > { %v1054_v54 = vadd.f32 %v1053_v50, %v991_v44  ;;  %v922_v55 = vadd.f32 %v921_v48, %v1904_v43  ;;  %v1005_v50 = vmul.f32 %v1974_v46, %v1974_v46  ;;  %s1131_s23 = sshll.u32 %s214_s22, 4  ;;  %s1102_s7 = scalar_lea.sflag [#allocation9], %s1850_s26  ;;  %s1132_s23 = int_to_ptr.vmem [resolvable:$true] %s1131_s23 }
 0x17b   : > { %s1626_s10 = scalar_lea.vmem %s1132_s23, 32  ;;  %s1707_s16 = smov [#allocation8]  }
 0x17c   : > { %v923_v58 = vadd.f32 %v922_v55, %v1914_v47  ;;  %v1055_v61 = vadd.f32 %v1054_v54, %v992_v51  ;;  %p1627_p7 = scmp.ne.s32.totalorder %s1132_s23, %s1626_s10  ;;  %s1630_s11 = sshll.u32 %s1707_s16, 4  ;;  %s1631_s11 = int_to_ptr.vmem [resolvable:$false] %s1630_s11 }
 0x17d   : > { %s1632_s21 = scalar_lea.vmem %s1631_s11, 64  ;;  %p1633_p12 = scmp.lt.s32.totalorder %s1132_s23, %s1631_s11 }
 0x17e   : > { %v924_v2 = vadd.f32 %v1897_v41, %v923_v58  ;;  %v1056_v4 = vadd.f32 %v1055_v61, %v993_v60  ;;  %v998_v41 = vmul.f32 %v1919_v52, %v1919_v52  ;;  %v1008_v60 = vmul.f32 %v1984_v59, %v1984_v59  ;;  %p1628_p9 = pnand %p1627_p7, %p2248_p11  ;;  %p1634_p13 = scmp.lt.s32.totalorder %s1632_s21, %s1626_s10 }
 0x180   : > { %v1057_v6 = vadd.f32 %v1056_v4, %v994_v63  ;;  %v925_v10 = vadd.f32 %v1909_v45, %v924_v2  ;;  %v999_v45 = vmul.f32 %v1929_v62, %v1929_v62  ;;  %v1009_v2 = vmul.f32 %v1994_v7, %v1994_v7  ;;  %p1629_p10 = pneg %p1628_p9  ;;  %p1635_p0 = por %p1634_p13, %p1633_p12 }
 0x182   : > { %v926_v43 = vadd.f32 %v925_v10, %v1924_v57  ;;  %v1058_v12 = vadd.f32 %v1057_v6, %v995_v5  ;;  %p1636_p5 = pnand %p1635_p0, %p1629_p10 }
 0x184   : > { %v1059_v47 = vadd.f32 %v1058_v12, %v996_v11  ;;  %v927_v15 = vadd.f32 %v926_v43, %v1934_v3  ;;  %v1012_v43 = vmul.f32 %v2004_v20, %v2004_v20 }
 0x186   : > { %v928_v19 = vadd.f32 %v1919_v52, %v927_v15  ;;  %v1060_v21 = vadd.f32 %v1059_v47, %v997_v17  ;;  %v1002_v52 = vmul.f32 %v1939_v8, %v1939_v8  ;;  %v1013_v47 = vmul.f32 %v2014_v32, %v2014_v32 }
 0x188   : > { %v1061_v22 = vadd.f32 %v1060_v21, %v998_v41  ;;  %v929_v25 = vadd.f32 %v1929_v62, %v928_v19  ;;  %v1003_v62 = vmul.f32 %v1949_v18, %v1949_v18  ;;  %v1016_v21 = vmul.f32 %v2024_v49, %v2024_v49 }
 0x18a   : > { %v930_v57 = vadd.f32 %v929_v25, %v1944_v13  ;;  %v1062_v29 = vadd.f32 %v1061_v22, %v999_v45  ;;  %v1017_v25 = vmul.f32 %v2034_v0, %v2034_v0 }
 0x18c   : > { %v1063_v30 = vadd.f32 %v1062_v29, %v1000_v27  ;;  %v931_v3 = vadd.f32 %v930_v57, %v1954_v23 }
 0x18e   : > { %v932_v35 = vadd.f32 %v1939_v8, %v931_v3  ;;  %v1064_v36 = vadd.f32 %v1063_v30, %v1001_v34  ;;  %v1006_v8 = vmul.f32 %v1959_v28, %v1959_v28  ;;  %v1020_v3 = vmul.f32 %v2046_v16, %v2046_v16 }
 0x190   : > { %v1065_v37 = vadd.f32 %v1064_v36, %v1002_v52  ;;  %v933_v40 = vadd.f32 %v1949_v18, %v932_v35  ;;  %v1007_v18 = vmul.f32 %v1969_v38, %v1969_v38  ;;  %v1022_v35 = vmul.f32 %v2039_v9, %v2039_v9 }
 0x192   : > { %v934_v13 = vadd.f32 %v933_v40, %v1964_v33  ;;  %v1066_v44 = vadd.f32 %v1065_v37, %v1003_v62 }
 0x194   : > { %v1067_v48 = vadd.f32 %v1066_v44, %v1004_v42  ;;  %v935_v23 = vadd.f32 %v934_v13, %v1974_v46 }
 0x196   : > { %v936_v51 = vadd.f32 %v1959_v28, %v935_v23  ;;  %v1068_v54 = vadd.f32 %v1067_v48, %v1005_v50  ;;  %v1010_v28 = vmul.f32 %v1979_v53, %v1979_v53 }
 0x198   : > { %v1069_v55 = vadd.f32 %v1068_v54, %v1006_v8  ;;  %v937_v58 = vadd.f32 %v1969_v38, %v936_v51  ;;  %v1011_v38 = vmul.f32 %v1989_v1, %v1989_v1 }
 0x19a   : > { %v938_v33 = vadd.f32 %v937_v58, %v1984_v59  ;;  %v1070_v61 = vadd.f32 %v1069_v55, %v1007_v18 }
 0x19c   : > { %v1071_v63 = vadd.f32 %v1070_v61, %v1008_v60  ;;  %v939_v46 = vadd.f32 %v938_v33, %v1994_v7 }
 0x19e   : > { %v940_v4 = vadd.f32 %v1979_v53, %v939_v46  ;;  %v1072_v5 = vadd.f32 %v1071_v63, %v1009_v2  ;;  %v1014_v53 = vmul.f32 %v1999_v14, %v1999_v14 }
 0x1a0   : > { %v1073_v6 = vadd.f32 %v1072_v5, %v1010_v28  ;;  %v941_v10 = vadd.f32 %v1989_v1, %v940_v4  ;;  %v1015_v1 = vmul.f32 %v2009_v26, %v2009_v26 }
 0x1a2   : > { %v942_v59 = vadd.f32 %v941_v10, %v2004_v20  ;;  %v1074_v11 = vadd.f32 %v1073_v6, %v1011_v38 }
 0x1a4   : > { %v1075_v12 = vadd.f32 %v1074_v11, %v1012_v43  ;;  %v943_v7 = vadd.f32 %v942_v59, %v2014_v32 }
 0x1a6   : > { %v944_v15 = vadd.f32 %v1999_v14, %v943_v7  ;;  %v1076_v17 = vadd.f32 %v1075_v12, %v1013_v47  ;;  %v1018_v14 = vmul.f32 %v2019_v39, %v2019_v39 }
 0x1a8   : > { %v1077_v41 = vadd.f32 %v1076_v17, %v1014_v53  ;;  %v945_v19 = vadd.f32 %v2009_v26, %v944_v15  ;;  %v1019_v26 = vmul.f32 %v2029_v56, %v2029_v56 }
 0x1aa   : > { %v946_v20 = vadd.f32 %v945_v19, %v2024_v49  ;;  %v1078_v45 = vadd.f32 %v1077_v41, %v1015_v1 }
 0x1ac   : > { %v1079_v22 = vadd.f32 %v1078_v45, %v1016_v21  ;;  %v947_v32 = vadd.f32 %v946_v20, %v2034_v0 }
 0x1ae   : > { %v948_v57 = vadd.f32 %v2019_v39, %v947_v32  ;;  %v1080_v27 = vadd.f32 %v1079_v22, %v1017_v25  ;;  %v1021_v39 = vmul.f32 %v2063_v31, %v2063_v31 }
 0x1b0   : > { %v1081_v29 = vadd.f32 %v1080_v27, %v1018_v14  ;;  %v949_v30 = vadd.f32 %v2029_v56, %v948_v57  ;;  %v1023_v56 = vmul.f32 %v2051_v24, %v2051_v24 }
 0x1b2   : > { %v950_v49 = vadd.f32 %v949_v30, %v2046_v16  ;;  %v1082_v34 = vadd.f32 %v1081_v29, %v1019_v26 }
 0x1b4   : > { %v1083_v0 = vadd.f32 %v1082_v34, %v1020_v3  ;;  %v951_v52 = vadd.f32 %v950_v49, %v2063_v31 }
 0x1b6   : > { %v952_v36 = vadd.f32 %v2039_v9, %v951_v52  ;;  %v1084_v62 = vadd.f32 %v1083_v0, %v1021_v39 }
 0x1b8   : > { %v953_v16 = vadd.f32 %v2051_v24, %v952_v36  ;;  %v1085_v37 = vadd.f32 %v1084_v62, %v1022_v35 }
 0x1ba   : > { %v954_v40 = vrot.slane %v953_v16, 4  ;;  %v1086_v13 = vadd.f32 %v1085_v37, %v1023_v56 }
 0x1bc   : > { %v955_v42 = vadd.f32 %v954_v40, %v953_v16  ;;  %v1087_v44 = vrot.slane %v1086_v13, 4 }
 0x1be   : > { %v956_v48 = vrot.slane %v955_v42, 2  ;;  %v1088_v23 = vadd.f32 %v1087_v44, %v1086_v13 }
 0x1c0   : > { %v957_v31 = vadd.f32 %v956_v48, %v955_v42  ;;  %v1089_v50 = vrot.slane %v1088_v23, 2 }
 0x1c2   : > { %v958_v8 = vrot.slane %v957_v31, 1  ;;  %v1090_v9 = vadd.f32 %v1089_v50, %v1088_v23 }
 0x1c4   : > { %v1091_v51 = vrot.slane %v1090_v9, 1  ;;  %v959_v24 = vadd.f32 %v958_v8, %v957_v31 }
 0x1c6   : > { %v1092_v54 = vadd.f32 %v1091_v51, %v1090_v9 }
 0x1c8   : > { %v1094_v18 = vsel %vm1093_vm0, %v959_v24, %v1092_v54 }
 0x1c9   : > { %1095 = vst [vmem:[%s214_s22] sm:$0x3] %v1094_v18 }
 0x1ca   : > { %1639 = shalt.err (!%p1636_p5)
}
 0x1cb   : > { %s1640_s27 = scalar_lea.hbm %s2192_s9, 32  ;;  %s1644_s4 = scalar_lea.hbm %s2232_s3, 64 }
 0x1cc   : > { %p1641_p2 = scmp.ne.s32.totalorder %s2192_s9, %s1640_s27  ;;  %p1645_p6 = scmp.lt.s32.totalorder %s2192_s9, %s2232_s3 }
 0x1cd   : > { %p1646_p8 = scmp.lt.s32.totalorder %s1644_s4, %s1640_s27 }
 0x1ce   : > { %p1642_p1 = pnand %p1641_p2, %p2248_p11 }
 0x1cf   : > { %p1647_p3 = por %p1646_p8, %p1645_p6 }
 0x1d0   : > { %p1643_p4 = pneg %p1642_p1 }
 0x1d2   : > { %p1648_p7 = pnand %p1647_p3, %p1643_p4 }
 0x1d4   : > { %1651 = shalt.err (!%p1648_p7)
}
 0x1d5   : > { %1447 = dma.vmem_to_hbm [thread:$0]  (%p2248_p11), %s1132_s23, 32, %s2192_s9, %s1102_s7  }
 0x1d6 PF: > { %s1143_s28 = sand.u32 1, %s1686_s12   ;;  %p2249_p9 = scmp.ne.s32.totalorder %s2238_s19, 0 }
 0x1d7   : > { %p2250_p10 = scmp.ge.s32.totalorder %s1698_s15, 2  ;;  %s1144_s29 = scalar_lea.sflag [#allocation4], %s1143_s28 }
 0x1d9   : > { %p1459_p12 = pnand %p2250_p10, %p2249_p9 }
 0x1db   : > { %p1460_p13 = pneg %p1459_p12 }
 0x1dd   : > { %1677 = dma.done.wait (%p1460_p13), %s1144_s29, 8192  }
 0x1de   : > { %1679 = vsyncadd (%p1460_p13), %s1144_s29, 4294959104  ;;  %s1153_s17 = scalar_lea.sflag [#allocation9], %s1143_s28 }
 0x1df   : > { %1681 = dma.done.wait (%p1460_p13), %s1153_s17, 32  }
 0x1e0   : > { %1683 = vsyncadd (%p1460_p13), %s1153_s17, 4294967264  ;;  %p21_p11 = scmp.ge.s32.totalorder %s1782_s24, 4   ;;  %s2251_s12 = smov %s1690_s13 }
 0x1e1   : > { %s2252_s13 = smov %s1694_s14  ;;  %s2253_s14 = smov %s1802_s5 }
 0x1e2   : > { %s2254_s15 = smov %s1782_s24  ;;  %23 = sbr.rel (!%p21_p11) target bundleno = 8 (0x8), region = 94 }
 0x1e7   :  { %1158 = vsyncpa [#allocation3], 1 }
 0x1e8   :  { %1160 = vsyncpa [#allocation3 + $0x1], 1 }
 0x1e9   :  { %1161 = vsyncpa [#allocation6], 1 }
 0x1ea   :  { %1162 = vsyncpa [#allocation4], 1 }
 0x1eb   :  { %1164 = vsyncpa [#allocation4 + $0x1], 1 }
 0x1ec   :  { %1165 = vsyncpa [#allocation9], 1 }
 0x1ed   :  { %1167 = vsyncpa [#allocation9 + $0x1], 1 }

</bundles_post_ra>
